<compile_context>
chip_gen: v5e
topology: v5e:2x2
jax: 0.10.0
libtpu: 0.0.40
codegen_flags: <defaults>
</compile_context>

<pallas_src>
import functools

import jax
import jax.numpy as jnp
from jax.experimental import pallas as pl
from jax.experimental.pallas import tpu as pltpu


def _round_up(n, m):
    return ((n + m - 1) // m) * m


def _patch_expand_kernel(x_ref, w_ref, g_ref, b_ref, sel_ref, selt_ref, o_ref,
                         *, eps, inv_group):
    # x_ref    (tm, D)    bf16 input tokens tile
    # w_ref    (D, 2D)    bf16 expand weight (pre-transposed)
    # g_ref    (1, 2D)    f32  LayerNorm gamma tiled 4x
    # b_ref    (1, 2D)    f32  LayerNorm beta  tiled 4x
    # sel_ref  (2D, 4)    f32  group indicator  (col g == 1 for channels of group g)
    # selt_ref (4, 2D)    f32  its transpose (broadcast-back)
    # o_ref    (tm, 2D)   normalized expanded tokens
    y = jnp.dot(x_ref[...], w_ref[...], preferred_element_type=jnp.float32)

    # Grouped LayerNorm statistics via indicator matmuls: avoids the
    # (tm, 4, group) reshape (lane relayout when group % 128 != 0) and keeps
    # the work on the otherwise idle MXU slot.  Single-pass mean/var.
    sel = sel_ref[...]
    sums = jnp.dot(y, sel, preferred_element_type=jnp.float32)          # (tm, 4)
    sqs = jnp.dot(y * y, sel, preferred_element_type=jnp.float32)       # (tm, 4)
    mean = sums * inv_group
    var = jnp.maximum(sqs * inv_group - mean * mean, 0.0)
    inv = jax.lax.rsqrt(var + eps)                                       # EUP

    sel_t = selt_ref[...]
    mean_b = jnp.dot(mean, sel_t, preferred_element_type=jnp.float32)   # (tm, 2D)
    inv_b = jnp.dot(inv, sel_t, preferred_element_type=jnp.float32)     # (tm, 2D)

    o_ref[...] = ((y - mean_b) * inv_b * g_ref[...] + b_ref[...]).astype(o_ref.dtype)


def prepare_patch_expansion_params(w_expand, gamma, beta,
                                   compute_dtype=jnp.bfloat16):
    """Hoist the per-call weight relayout: store W pre-transposed (D, 2D) and
    gamma/beta tiled 4x.  Do this once, not per forward call."""
    w_t = jnp.transpose(w_expand).astype(compute_dtype)            # (D, 2D)
    two_d = w_t.shape[1]
    g_full = jnp.tile(gamma, 4).reshape(1, two_d).astype(jnp.float32)
    b_full = jnp.tile(beta, 4).reshape(1, two_d).astype(jnp.float32)
    return w_t, g_full, b_full


def patch_expansion_apply(x, w_t, g_full, b_full, *, tm=512, eps=1e-5,
                          out_dtype=jnp.float32):
    """x: (B, H, W, dim).  w_t: (dim, 2*dim) pre-transposed (bf16 ok).
    g_full/b_full: (1, 2*dim).  Returns (B, 2H, 2W, dim//2)."""
    B, H, W, D = x.shape
    assert D % 2 == 0
    two_d = 2 * D
    group = D // 2
    N = B * H * W
    compute_dtype = w_t.dtype

    x_flat = x.reshape(N, D).astype(compute_dtype)

    # Token tile: as big as useful, multiple of 8, pad N so the grid divides.
    tm = max(8, min(int(tm), _round_up(N, 8)))
    tm = (tm // 8) * 8
    n_pad = _round_up(N, tm)
    if n_pad != N:
        x_flat = jnp.pad(x_flat, ((0, n_pad - N), (0, 0)))

    # Group-indicator matrices for the in-kernel grouped-LN stat matmuls.
    grp_id = jnp.arange(two_d, dtype=jnp.int32) // group
    sel = (grp_id[:, None] == jnp.arange(4, dtype=jnp.int32)[None, :]
           ).astype(jnp.float32)                                   # (2D, 4)
    sel_t = jnp.transpose(sel)                                     # (4, 2D)

    # Explicit VMEM budget for the double-buffered tiles (headroom included).
    in_bytes = jnp.dtype(compute_dtype).itemsize
    out_bytes = jnp.dtype(out_dtype).itemsize
    needed = (2 * tm * D * in_bytes            # x tile
              + 2 * D * two_d * in_bytes       # weight
              + 2 * tm * two_d * out_bytes     # output tile
              + 2 * 2 * two_d * 4              # gamma / beta
              + 2 * 2 * two_d * 4 * 4)         # sel / sel_t
    vmem_limit = int(min(64 * 1024 * 1024, max(32 * 1024 * 1024, 3 * needed)))

    kernel = functools.partial(_patch_expand_kernel, eps=eps,
                               inv_group=1.0 / float(group))

    y_flat = pl.pallas_call(
        kernel,
        out_shape=jax.ShapeDtypeStruct((n_pad, two_d), out_dtype),
        grid_spec=pltpu.PrefetchScalarGridSpec(
            num_scalar_prefetch=0,
            grid=(n_pad // tm,),
            in_specs=[
                pl.BlockSpec((tm, D), lambda i: (i, 0)),
                pl.BlockSpec((D, two_d), lambda i: (0, 0)),
                pl.BlockSpec((1, two_d), lambda i: (0, 0)),
                pl.BlockSpec((1, two_d), lambda i: (0, 0)),
                pl.BlockSpec((two_d, 4), lambda i: (0, 0)),
                pl.BlockSpec((4, two_d), lambda i: (0, 0)),
            ],
            out_specs=pl.BlockSpec((tm, two_d), lambda i: (i, 0)),
        ),
        compiler_params=pltpu.CompilerParams(
            dimension_semantics=("parallel",),
            vmem_limit_bytes=vmem_limit),
    )(x_flat, w_t, g_full, b_full, sel, sel_t)

    if n_pad != N:
        y_flat = y_flat[:N]

    # Pixel-shuffle rearrangement (pure index shuffle, glue JAX).
    # TODO(synk): when D//2 >= 128, fuse this into out_specs (write the
    # (B,2H,2W,D//2) layout directly) to save an HBM round trip; for small
    # dims the lane-dense (tm, 2D) store is the faster option.
    y = y_flat.reshape(B, H, W, 2, 2, group)
    y = jnp.transpose(y, (0, 1, 3, 2, 4, 5))
    y = y.reshape(B, 2 * H, 2 * W, group)
    return y


def patch_expansion(x, w_expand, gamma, beta, *, tm=512, eps=1e-5,
                    compute_dtype=jnp.bfloat16, out_dtype=jnp.float32):
    """Convenience wrapper: prepare params then apply (prefer calling
    prepare_patch_expansion_params once and patch_expansion_apply per step)."""
    w_t, g_full, b_full = prepare_patch_expansion_params(
        w_expand, gamma, beta, compute_dtype=compute_dtype)
    return patch_expansion_apply(x, w_t, g_full, b_full, tm=tm, eps=eps,
                                 out_dtype=out_dtype)


def _reference(x, w_expand, gamma, beta, eps=1e-5):
    # Pure-JAX replica of the PyTorch forward for verification.
    y = jnp.einsum("bhwd,cd->bhwc", x, w_expand)
    B, H, W, C = y.shape
    y = y.reshape(B, H, W, 2, 2, C // 4)
    y = jnp.transpose(y, (0, 1, 3, 2, 4, 5))
    y = y.reshape(B, 2 * H, 2 * W, C // 4)
    mean = jnp.mean(y, axis=-1, keepdims=True)
    var = jnp.mean(jnp.square(y - mean), axis=-1, keepdims=True)
    return (y - mean) * jax.lax.rsqrt(var + eps) * gamma + beta


if __name__ == "__main__":
    # Small shapes consistent with the module: B=2, H=W=8, dim=32.
    B, H, W, dim = 2, 8, 8, 32
    key = jax.random.PRNGKey(0)
    kx, kw, kg, kb = jax.random.split(key, 4)

    x = jax.random.normal(kx, (B, H, W, dim), dtype=jnp.float32)
    # Deterministic parameter init (synthetic; no checkpoint loading).
    w_expand = jax.random.normal(kw, (2 * dim, dim), dtype=jnp.float32) * 0.05
    gamma = 1.0 + 0.1 * jax.random.normal(kg, (dim // 2,), dtype=jnp.float32)
    beta = 0.1 * jax.random.normal(kb, (dim // 2,), dtype=jnp.float32)

    out = patch_expansion(x, w_expand, gamma, beta)
    out = jax.block_until_ready(out)
    assert out.shape == (B, 2 * H, 2 * W, dim // 2)

    # Tight check: reference with the same bf16-quantized matmul operands.
    xq = x.astype(jnp.bfloat16).astype(jnp.float32)
    wq = w_expand.astype(jnp.bfloat16).astype(jnp.float32)
    ref_q = _reference(xq, wq, gamma, beta)
    assert jnp.allclose(out, ref_q, atol=2e-3, rtol=2e-3)

    # Loose check: original all-f32 module semantics (bf16 MXU compromise).
    ref_f32 = _reference(x, w_expand, gamma, beta)
    assert jnp.allclose(out, ref_f32, atol=5e-2, rtol=5e-2)

    print("KERNEL_OK")
</pallas_src>

<mosaic_0001>
module attributes {stable_mosaic.version = 11 : i64} {
  func.func @_patch_expand_kernel(%arg0: i32, %arg1: memref<128x32xbf16, #tpu.memory_space<vmem>>, %arg2: memref<32x64xbf16, #tpu.memory_space<vmem>>, %arg3: memref<1x64xf32, #tpu.memory_space<vmem>>, %arg4: memref<1x64xf32, #tpu.memory_space<vmem>>, %arg5: memref<64x4xf32, #tpu.memory_space<vmem>>, %arg6: memref<4x64xf32, #tpu.memory_space<vmem>>, %arg7: memref<128x64xf32, #tpu.memory_space<vmem>>) attributes {dimension_semantics = [#tpu.dimension_semantics<parallel>], iteration_bounds = array<i64: 1>, scalar_prefetch = 0 : i64, scratch_operands = 0 : i64, tpu.core_type = #tpu.core_type<tc>, window_params = [{transform_indices = @transform_0, window_bounds = array<i64: 128, 32>}, {pipeline_mode = #tpu.pipeline_mode<synchronous>, transform_indices = @transform_1, window_bounds = array<i64: 32, 64>}, {pipeline_mode = #tpu.pipeline_mode<synchronous>, transform_indices = @transform_2, window_bounds = array<i64: 1, 64>}, {pipeline_mode = #tpu.pipeline_mode<synchronous>, transform_indices = @transform_3, window_bounds = array<i64: 1, 64>}, {pipeline_mode = #tpu.pipeline_mode<synchronous>, transform_indices = @transform_4, window_bounds = array<i64: 64, 4>}, {pipeline_mode = #tpu.pipeline_mode<synchronous>, transform_indices = @transform_5, window_bounds = array<i64: 4, 64>}, {transform_indices = @transform_6, window_bounds = array<i64: 128, 64>}]} {
    %c0 = arith.constant 0 : index
    %c0_0 = arith.constant 0 : index
    %0 = vector.load %arg1[%c0, %c0_0] : memref<128x32xbf16, #tpu.memory_space<vmem>>, vector<128x32xbf16>
    %c0_1 = arith.constant 0 : index
    %c0_2 = arith.constant 0 : index
    %1 = vector.load %arg2[%c0_1, %c0_2] : memref<32x64xbf16, #tpu.memory_space<vmem>>, vector<32x64xbf16>
    %cst = arith.constant dense<0.000000e+00> : vector<128x64xf32>
    %2 = tpu.matmul %0, %1, %cst {dimension_numbers = #tpu.dot_dimension_numbers<[1], [0], [0], [1], [0, 0, 1, 1], [], []>} : vector<128x32xbf16>, vector<32x64xbf16>, vector<128x64xf32> -> vector<128x64xf32>
    %c0_3 = arith.constant 0 : index
    %c0_4 = arith.constant 0 : index
    %3 = vector.load %arg5[%c0_3, %c0_4] : memref<64x4xf32, #tpu.memory_space<vmem>>, vector<64x4xf32>
    %cst_5 = arith.constant dense<0.000000e+00> : vector<128x4xf32>
    %4 = tpu.matmul %2, %3, %cst_5 {dimension_numbers = #tpu.dot_dimension_numbers<[1], [0], [0], [1], [0, 0, 1, 1], [], []>} : vector<128x64xf32>, vector<64x4xf32>, vector<128x4xf32> -> vector<128x4xf32>
    %5 = arith.mulf %2, %2 : vector<128x64xf32>
    %cst_6 = arith.constant dense<0.000000e+00> : vector<128x4xf32>
    %6 = tpu.matmul %5, %3, %cst_6 {dimension_numbers = #tpu.dot_dimension_numbers<[1], [0], [0], [1], [0, 0, 1, 1], [], []>} : vector<128x64xf32>, vector<64x4xf32>, vector<128x4xf32> -> vector<128x4xf32>
    %cst_7 = arith.constant 6.250000e-02 : f32
    %7 = vector.broadcast %cst_7 : f32 to vector<128x4xf32>
    %8 = arith.mulf %4, %7 : vector<128x4xf32>
    %cst_8 = arith.constant 6.250000e-02 : f32
    %9 = vector.broadcast %cst_8 : f32 to vector<128x4xf32>
    %10 = arith.mulf %6, %9 : vector<128x4xf32>
    %11 = arith.mulf %8, %8 : vector<128x4xf32>
    %12 = arith.subf %10, %11 : vector<128x4xf32>
    %cst_9 = arith.constant 0.000000e+00 : f32
    %13 = vector.broadcast %cst_9 : f32 to vector<128x4xf32>
    %14 = arith.maximumf %12, %13 : vector<128x4xf32>
    %cst_10 = arith.constant 9.99999974E-6 : f32
    %15 = vector.broadcast %cst_10 : f32 to vector<128x4xf32>
    %16 = arith.addf %14, %15 : vector<128x4xf32>
    %17 = math.rsqrt %16 : vector<128x4xf32>
    %c0_11 = arith.constant 0 : index
    %c0_12 = arith.constant 0 : index
    %18 = vector.load %arg6[%c0_11, %c0_12] : memref<4x64xf32, #tpu.memory_space<vmem>>, vector<4x64xf32>
    %cst_13 = arith.constant dense<0.000000e+00> : vector<128x64xf32>
    %19 = tpu.matmul %8, %18, %cst_13 {dimension_numbers = #tpu.dot_dimension_numbers<[1], [0], [0], [1], [0, 0, 1, 1], [], []>} : vector<128x4xf32>, vector<4x64xf32>, vector<128x64xf32> -> vector<128x64xf32>
    %cst_14 = arith.constant dense<0.000000e+00> : vector<128x64xf32>
    %20 = tpu.matmul %17, %18, %cst_14 {dimension_numbers = #tpu.dot_dimension_numbers<[1], [0], [0], [1], [0, 0, 1, 1], [], []>} : vector<128x4xf32>, vector<4x64xf32>, vector<128x64xf32> -> vector<128x64xf32>
    %21 = arith.subf %2, %19 : vector<128x64xf32>
    %22 = arith.mulf %21, %20 : vector<128x64xf32>
    %c0_15 = arith.constant 0 : index
    %c0_16 = arith.constant 0 : index
    %23 = vector.load %arg3[%c0_15, %c0_16] : memref<1x64xf32, #tpu.memory_space<vmem>>, vector<1x64xf32>
    %24 = vector.broadcast %23 : vector<1x64xf32> to vector<128x64xf32>
    %25 = arith.mulf %22, %24 : vector<128x64xf32>
    %c0_17 = arith.constant 0 : index
    %c0_18 = arith.constant 0 : index
    %26 = vector.load %arg4[%c0_17, %c0_18] : memref<1x64xf32, #tpu.memory_space<vmem>>, vector<1x64xf32>
    %27 = vector.broadcast %26 : vector<1x64xf32> to vector<128x64xf32>
    %28 = arith.addf %25, %27 : vector<128x64xf32>
    %c0_19 = arith.constant 0 : index
    %c0_20 = arith.constant 0 : index
    %29 = vector.load %arg7[%c0_19, %c0_20] : memref<128x64xf32, #tpu.memory_space<vmem>>, vector<128x64xf32>
    tpu.vector_store %arg7[%c0_19, %c0_20], %28 {strides = array<i32>} : memref<128x64xf32, #tpu.memory_space<vmem>>, vector<128x64xf32>,
    return
  }
  func.func @transform_0(%arg0: i32) -> (i32, i32) {
    %c0_i32 = arith.constant 0 : i32
    %c0_i32_0 = arith.constant 0 : i32
    return %arg0, %c0_i32 : i32, i32
  }
  func.func @transform_1(%arg0: i32) -> (i32, i32) {
    %c0_i32 = arith.constant 0 : i32
    %c0_i32_0 = arith.constant 0 : i32
    %c0_i32_1 = arith.constant 0 : i32
    return %c0_i32, %c0_i32_0 : i32, i32
  }
  func.func @transform_2(%arg0: i32) -> (i32, i32) {
    %c0_i32 = arith.constant 0 : i32
    %c0_i32_0 = arith.constant 0 : i32
    %c0_i32_1 = arith.constant 0 : i32
    return %c0_i32, %c0_i32_0 : i32, i32
  }
  func.func @transform_3(%arg0: i32) -> (i32, i32) {
    %c0_i32 = arith.constant 0 : i32
    %c0_i32_0 = arith.constant 0 : i32
    %c0_i32_1 = arith.constant 0 : i32
    return %c0_i32, %c0_i32_0 : i32, i32
  }
  func.func @transform_4(%arg0: i32) -> (i32, i32) {
    %c0_i32 = arith.constant 0 : i32
    %c0_i32_0 = arith.constant 0 : i32
    %c0_i32_1 = arith.constant 0 : i32
    return %c0_i32, %c0_i32_0 : i32, i32
  }
  func.func @transform_5(%arg0: i32) -> (i32, i32) {
    %c0_i32 = arith.constant 0 : i32
    %c0_i32_0 = arith.constant 0 : i32
    %c0_i32_1 = arith.constant 0 : i32
    return %c0_i32, %c0_i32_0 : i32, i32
  }
  func.func @transform_6(%arg0: i32) -> (i32, i32) {
    %c0_i32 = arith.constant 0 : i32
    %c0_i32_0 = arith.constant 0 : i32
    return %arg0, %c0_i32 : i32, i32
  }
}

</mosaic_0001>

<bundles_post_ra>
// kernel: tpu_custom_call.1
= control target key start
LH: loop header
LB: loop body
LE: loop exit
PB: predicated region body
PF: predicated region fallthrough
CT: control target
= control target key end

     0   :  { %vm96_vm0 = vcmask 261120   ;;  %vm178_vm1 = vcmask 523264   ;;  %vm727_vm2 = vcmask 1043456   ;;  %vm678_vm3 = vcmask 31744   ;;  %s1666_s1 = inlined_call_operand.vmem [shape: bf16[32,64], index: 1, kind: input, shape index: {}]   ;;  %s1667_s0 = inlined_call_operand.vmem [shape: bf16[128,32], index: 0, kind: input, shape index: {}]   ;;  %s1668_s4 = inlined_call_operand.vmem [shape: f32[64,4], index: 4, kind: input, shape index: {}]   ;;  %s1669_s5 = inlined_call_operand.vmem [shape: f32[4,64], index: 5, kind: input, shape index: {}]   ;;  %s1670_s2 = inlined_call_operand.vmem [shape: f32[1,64], index: 2, kind: input, shape index: {}]   ;;  %s1671_s3 = inlined_call_operand.vmem [shape: f32[1,64], index: 3, kind: input, shape index: {}]   ;;  %s1672_s6 = inlined_call_operand.vmem [shape: f32[128,64], index: 6, kind: output, shape index: {}]  }
   0x1   :  { %v1124_v0 = vld [vmem:[%s1666_s1 + $0x8] sm:$0xff]  ;;  %v1123_v1 = vld [vmem:[%s1666_s1] sm:$0xff]  ;;  %v1117_v4 = vld [vmem:[%s1667_s0 + $0x10] sm:$0xff] }
   0x2   :  { %127 = vmatpush.bf16.msra.mxu0 %v1124_v0  ;;  %1125 = vmatpush.bf16.msra.mxu1 %v1124_v0  ;;  %v1115_v2 = vld [vmem:[%s1667_s0] sm:$0xff]  ;;  %v1116_v3 = vld [vmem:[%s1667_s0 + $0x8] sm:$0xff]  ;;  %v1121_v6 = vld [vmem:[%s1667_s0 + $0x30] sm:$0xff] }
   0x3   :  { %1126 = vmatpush.bf16.msra.mxu2 %v1124_v0  ;;  %v1120_v5 = vld [vmem:[%s1667_s0 + $0x28] sm:$0xff]  ;;  %v177_v7 = vld [vmem:[%s1668_s4 + $0x38] sm:$0xff]  ;;  %v176_v8 = vld [vmem:[%s1668_s4 + $0x30] sm:$0xff] }
   0x4   :  { %v175_v9 = vld [vmem:[%s1668_s4 + $0x28] sm:$0xff]  ;;  %v174_v10 = vld [vmem:[%s1668_s4 + $0x20] sm:$0xff]  ;;  %v173_v11 = vld [vmem:[%s1668_s4 + $0x18] sm:$0xff] }
   0x5   :  { %v172_v12 = vld [vmem:[%s1668_s4 + $0x10] sm:$0xff]  ;;  %v1118_v13 = vld [vmem:[%s1667_s0 + $0x18] sm:$0xff]  ;;  %v171_v14 = vld [vmem:[%s1668_s4 + $0x8] sm:$0xff] }
   0x6   :  { %128 = vmatpush.bf16.msra.mxu0 %v1123_v1  ;;  %1127 = vmatpush.bf16.msra.mxu1 %v1123_v1  ;;  %v1122_v15 = vld [vmem:[%s1667_s0 + $0x38] sm:$0xff]  ;;  %v170_v16 = vld [vmem:[%s1668_s4] sm:$0xff] }
   0x7   :  { %1128 = vmatpush.bf16.msra.mxu2 %v1123_v1  ;;  %v1119_v17 = vld [vmem:[%s1667_s0 + $0x20] sm:$0xff] }
   0x8   :  { %v677_v44 = vld [vmem:[%s1669_s5] sm:$0xf] }
   0x9   :  { %1041 = vmatmul.msk.bf16.vlgmr.msra.gmra.mxu0 %vm96_vm0, %v1115_v2  ;;  %1046 = vmatmul.msk.bf16.vlgmr.msra.gmra.mxu1 %vm96_vm0, %v1120_v5 }
   0xa   :  { %1047 = vmatmul.msk.bf16.vlgmr.msra.gmra.mxu2 %vm96_vm0, %v1121_v6  ;;  %235 = vmatpush.msrb.mxu1 %v177_v7 }
   0xb   :  { %364 = vmatpush.msrb.mxu2 %v177_v7  ;;  %1081 = vmatpush.msk.msrb.mxu0 %vm727_vm2, %v677_v44 }
   0xc   :  { %236 = vmatpush.msrb.mxu1 %v176_v8  ;;  %1130 = vmatpush.msk.msra.mxu3 %vm727_vm2, %v677_v44 }
   0xd   :  { %365 = vmatpush.msrb.mxu2 %v176_v8 }
   0xe   :  { %237 = vmatpush.msrb.mxu1 %v175_v9  ;;  %1098 = vmatpush.msk.msrb.mxu3 %vm727_vm2, %v677_v44 }
   0xf   :  { %366 = vmatpush.msrb.mxu2 %v175_v9 }
  0x10   :  { %238 = vmatpush.msrb.mxu1 %v174_v10 }
  0x11   :  { %367 = vmatpush.msrb.mxu2 %v174_v10 }
  0x12   :  { %239 = vmatpush.msrb.mxu1 %v173_v11 }
  0x13   :  { %368 = vmatpush.msrb.mxu2 %v173_v11 }
  0x14   :  { %240 = vmatpush.msrb.mxu1 %v172_v12 }
  0x15   :  { %369 = vmatpush.msrb.mxu2 %v172_v12 }
  0x16   :  { %241 = vmatpush.msrb.mxu1 %v171_v14 }
  0x17   :  { %370 = vmatpush.msrb.mxu2 %v171_v14 }
  0x18   :  { %242 = vmatpush.msrb.mxu1 %v170_v16 }
  0x19   :  { %1042 = vmatmul.msk.bf16.gmra.mxu0 %vm96_vm0, %v1116_v3  ;;  %371 = vmatpush.msrb.mxu2 %v170_v16 }
  0x1a   :  { %1048 = vmatmul.msk.bf16.gmra.mxu2 %vm96_vm0, %v1122_v15  ;;  %1129 = vmatpush.msk.msra.mxu1 %vm727_vm2, %v677_v44 }
  0x29   :  { %1043 = vmatmul.msk.bf16.gmra.mxu0 %vm96_vm0, %v1117_v4 }
  0x39   :  { %1044 = vmatmul.msk.bf16.gmra.mxu0 %vm96_vm0, %v1118_v13 }
  0x49   :  { %1045 = vmatmul.msk.bf16.gmra.mxu0 %vm96_vm0, %v1119_v17 }
  0x86   :  { %v1262_v18 = vpop.f32.mrf.mxu0  ;;  %v1332_v38 = vpop.f32.mrf.mxu1 }
  0x87   :  { %v292_v19 = vmul.f32 %v1262_v18, %v1262_v18  ;;  %1049 = vmatmul.msk.f32.vlgmr.msrb.gmra.mxu1 %vm178_vm1, %v1262_v18  ;;  %v302_v39 = vmul.f32 %v1332_v38, %v1332_v38 }
  0x89   :  { %1065 = vmatmul.msk.f32.vlgmr.msrb.gmra.mxu2 %vm178_vm1, %v292_v19 }
  0x8d   :  { %v1341_v41 = vpop.f32.mrf.mxu2 }
  0x8e   :  { %v1269_v20 = vpop.f32.mrf.mxu0  ;;  %v1339_v40 = vpop.f32.mrf.mxu1  ;;  %v304_v43 = vmul.f32 %v1341_v41, %v1341_v41 }
  0x8f   :  { %v293_v21 = vmul.f32 %v1269_v20, %v1269_v20  ;;  %1050 = vmatmul.msk.f32.gmra.mxu1 %vm178_vm1, %v1269_v20  ;;  %v303_v42 = vmul.f32 %v1339_v40, %v1339_v40 }
  0x91   :  { %1066 = vmatmul.msk.f32.gmra.mxu2 %vm178_vm1, %v293_v21 }
  0x95   :  { %v1355_v45 = vpop.f32.mrf.mxu2 }
  0x96   :  { %v1276_v22 = vpop.f32.mrf.mxu0  ;;  %v305_v46 = vmul.f32 %v1355_v45, %v1355_v45 }
  0x97   :  { %v294_v23 = vmul.f32 %v1276_v22, %v1276_v22  ;;  %1051 = vmatmul.msk.f32.gmra.mxu1 %vm178_vm1, %v1276_v22 }
  0x99   :  { %1067 = vmatmul.msk.f32.gmra.mxu2 %vm178_vm1, %v294_v23 }
  0x9d   :  { %v1363_v47 = vpop.f32.mrf.mxu2 }
  0x9e   :  { %v1283_v24 = vpop.f32.mrf.mxu0  ;;  %v306_v48 = vmul.f32 %v1363_v47, %v1363_v47 }
  0x9f   :  { %v295_v25 = vmul.f32 %v1283_v24, %v1283_v24  ;;  %1052 = vmatmul.msk.f32.gmra.mxu1 %vm178_vm1, %v1283_v24 }
  0xa1   :  { %1068 = vmatmul.msk.f32.gmra.mxu2 %vm178_vm1, %v295_v25 }
  0xa5   :  { %v1370_v49 = vpop.f32.mrf.mxu2 }
  0xa6   :  { %v1290_v26 = vpop.f32.mrf.mxu0  ;;  %v307_v50 = vmul.f32 %v1370_v49, %v1370_v49 }
  0xa7   :  { %v296_v27 = vmul.f32 %v1290_v26, %v1290_v26  ;;  %1053 = vmatmul.msk.f32.gmra.mxu1 %vm178_vm1, %v1290_v26 }
  0xa9   :  { %1069 = vmatmul.msk.f32.gmra.mxu2 %vm178_vm1, %v296_v27 }
  0xae   :  { %v1297_v28 = vpop.f32.mrf.mxu0 }
  0xaf   :  { %v297_v29 = vmul.f32 %v1297_v28, %v1297_v28  ;;  %1054 = vmatmul.msk.f32.gmra.mxu1 %vm178_vm1, %v1297_v28 }
  0xb1   :  { %1070 = vmatmul.msk.f32.gmra.mxu2 %vm178_vm1, %v297_v29 }
  0xb6   :  { %v1304_v30 = vpop.f32.mrf.mxu0 }
  0xb7   :  { %v298_v31 = vmul.f32 %v1304_v30, %v1304_v30  ;;  %1055 = vmatmul.msk.f32.gmra.mxu1 %vm178_vm1, %v1304_v30 }
  0xb9   :  { %1071 = vmatmul.msk.f32.gmra.mxu2 %vm178_vm1, %v298_v31 }
  0xbe   :  { %v1311_v32 = vpop.f32.mrf.mxu0 }
  0xbf   :  { %v299_v33 = vmul.f32 %v1311_v32, %v1311_v32  ;;  %1056 = vmatmul.msk.f32.gmra.mxu1 %vm178_vm1, %v1311_v32 }
  0xc1   :  { %1072 = vmatmul.msk.f32.gmra.mxu2 %vm178_vm1, %v299_v33 }
  0xc6   :  { %v1318_v34 = vpop.f32.mrf.mxu0 }
  0xc7   :  { %v300_v35 = vmul.f32 %v1318_v34, %v1318_v34  ;;  %1057 = vmatmul.msk.f32.gmra.mxu1 %vm178_vm1, %v1318_v34 }
  0xc9   :  { %1073 = vmatmul.msk.f32.gmra.mxu2 %vm178_vm1, %v300_v35 }
  0xce   :  { %v1325_v36 = vpop.f32.mrf.mxu0 }
  0xcf   :  { %v301_v37 = vmul.f32 %v1325_v36, %v1325_v36  ;;  %1058 = vmatmul.msk.f32.gmra.mxu1 %vm178_vm1, %v1325_v36 }
  0xd1   :  { %1074 = vmatmul.msk.f32.gmra.mxu2 %vm178_vm1, %v301_v37 }
  0xd7   :  { %1059 = vmatmul.msk.f32.gmra.mxu1 %vm178_vm1, %v1332_v38 }
  0xd9   :  { %1075 = vmatmul.msk.f32.gmra.mxu2 %vm178_vm1, %v302_v39 }
  0xdf   :  { %1060 = vmatmul.msk.f32.gmra.mxu1 %vm178_vm1, %v1339_v40 }
  0xe1   :  { %1076 = vmatmul.msk.f32.gmra.mxu2 %vm178_vm1, %v303_v42 }
  0xe7   :  { %1061 = vmatmul.msk.f32.gmra.mxu1 %vm178_vm1, %v1341_v41 }
  0xe9   :  { %1077 = vmatmul.msk.f32.gmra.mxu2 %vm178_vm1, %v304_v43 }
  0xef   :  { %1062 = vmatmul.msk.f32.gmra.mxu1 %vm178_vm1, %v1355_v45 }
  0xf1   :  { %1078 = vmatmul.msk.f32.gmra.mxu2 %vm178_vm1, %v305_v46 }
  0xf7   :  { %1063 = vmatmul.msk.f32.gmra.mxu1 %vm178_vm1, %v1363_v47 }
  0xf9   :  { %1079 = vmatmul.msk.f32.gmra.mxu2 %vm178_vm1, %v306_v48 }
  0xff   :  { %1064 = vmatmul.msk.f32.gmra.mxu1 %vm178_vm1, %v1370_v49 }
 0x101   :  { %1080 = vmatmul.msk.f32.gmra.mxu2 %vm178_vm1, %v307_v50 }
 0x104   :  { %v244_v51 = vpop.f32.mrf.mxu1 }
 0x105   :  { %v421_v52 = vmul.f32 0.0625, %v244_v51 }
 0x107   :  { %1082 = vmatmul.msk.f32.vlgmr.msrb.gmra.mxu0 %vm678_vm3, %v421_v52  ;;  %v453_v14 = vmul.f32 %v421_v52, %v421_v52 }
 0x10c   :  { %v247_v53 = vpop.f32.mrf.mxu1  ;;  %v373_v1 = vpop.f32.mrf.mxu2 }
 0x10d   :  { %v422_v54 = vmul.f32 0.0625, %v247_v53  ;;  %v437_v13 = vmul.f32 0.0625, %v373_v1 }
 0x10f   :  { %1083 = vmatmul.msk.f32.gmra.mxu0 %vm678_vm3, %v422_v54  ;;  %v469_v16 = vsub.f32 %v437_v13, %v453_v14  ;;  %v454_v25 = vmul.f32 %v422_v54, %v422_v54 }
 0x111   :  { %v485_v21 = vmax.f32 %v469_v16, 0.0 }
 0x113   :  { %v501_v29 = vadd.f32 1e-05, %v485_v21 }
 0x114   :  { %v250_v55 = vpop.f32.mrf.mxu1  ;;  %v376_v4 = vpop.f32.mrf.mxu2 }
 0x115   :  { %v423_v56 = vmul.f32 0.0625, %v250_v55  ;;  %v438_v23 = vmul.f32 0.0625, %v376_v4  ;;  %1133 = vrsqrt.f32 %v501_v29  ;;  %vm523_vm5 = vweird.f32 %v501_v29 }
 0x117   :  { %1084 = vmatmul.msk.f32.gmra.mxu0 %vm678_vm3, %v423_v56  ;;  %v470_v31 = vsub.f32 %v438_v23, %v454_v25  ;;  %v455_v42 = vmul.f32 %v423_v56, %v423_v56 }
 0x119   :  { %v486_v35 = vmax.f32 %v470_v31, 0.0 }
 0x11b   :  { %v1417_v44 = vadd.f32 1e-05, %v486_v35  ;;  %v1134_v50 = vpop.eup %1133 }
 0x11c   :  { %v253_v57 = vpop.f32.mrf.mxu1  ;;  %v379_v7 = vpop.f32.mrf.mxu2  ;;  %v518_v53 = vmul.f32 %v1134_v50, %v501_v29  ;;  %vm524_vm4 = vweird.f32 %v1134_v50 }
 0x11d   :  { %v424_v58 = vmul.f32 0.0625, %v253_v57  ;;  %v439_v37 = vmul.f32 0.0625, %v379_v7  ;;  %1135 = vrsqrt.f32 %v1417_v44  ;;  %vm525_vm6 = vmor %vm523_vm5, %vm524_vm4  ;;  %vm533_vm8 = vweird.f32 %v1417_v44 }
 0x11f   :  { %1085 = vmatmul.msk.f32.gmra.mxu0 %vm678_vm3, %v424_v58  ;;  %v471_v46 = vsub.f32 %v439_v37, %v455_v42  ;;  %v456_v54 = vmul.f32 %v424_v58, %v424_v58 }
 0x121   :  { %v487_v51 = vmax.f32 %v471_v46, 0.0 }
 0x123   :  { %v1136_v1 = vpop.eup %1135 }
 0x124   :  { %v256_v59 = vpop.f32.mrf.mxu1  ;;  %v382_v12 = vpop.f32.mrf.mxu2  ;;  %vm534_vm7 = vweird.f32 %v1136_v1 }
 0x125   :  { %v1381_v60 = vmul.f32 0.0625, %v256_v59  ;;  %v440_v52 = vmul.f32 0.0625, %v382_v12  ;;  %v1424_v59 = vadd.f32 1e-05, %v487_v51  ;;  %vm535_vm9 = vmor %vm533_vm8, %vm534_vm7 }
 0x127   :  { %1086 = vmatmul.msk.f32.gmra.mxu0 %vm678_vm3, %v1381_v60  ;;  %v472_v56 = vsub.f32 %v440_v52, %v456_v54  ;;  %1137 = vrsqrt.f32 %v1424_v59  ;;  %v457_v58 = vmul.f32 %v1381_v60, %v1381_v60  ;;  %vm543_vm11 = vweird.f32 %v1424_v59 }
 0x12c   :  { %v259_v61 = vpop.f32.mrf.mxu1  ;;  %v385_v19 = vpop.f32.mrf.mxu2 }
 0x12d   :  { %v1385_v62 = vmul.f32 0.0625, %v259_v61  ;;  %v441_v4 = vmul.f32 0.0625, %v385_v19  ;;  %v1138_v21 = vpop.eup %1137 }
 0x12e   :  { %v538_v25 = vmul.f32 %v1138_v21, %v1424_v59  ;;  %vm544_vm10 = vweird.f32 %v1138_v21 }
 0x12f   :  { %1087 = vmatmul.msk.f32.gmra.mxu0 %vm678_vm3, %v1385_v62  ;;  %v473_v12 = vsub.f32 %v441_v4, %v457_v58  ;;  %v458_v31 = vmul.f32 %v1385_v62, %v1385_v62  ;;  %vm545_vm12 = vmor %vm543_vm11, %vm544_vm10 }
 0x130   :  { %v539_v46 = vmul.f32 %v1138_v21, %v538_v25 }
 0x131   :  { %v489_v19 = vmax.f32 %v473_v12, 0.0 }
 0x132   :  { %v540_v62 = vmul.f32 0.5, %v539_v46 }
 0x133   :  { %v1444_v35 = vadd.f32 1e-05, %v489_v19 }
 0x134   :  { %v262_v63 = vpop.f32.mrf.mxu1  ;;  %v388_v39 = vpop.f32.mrf.mxu2 }
 0x135   :  { %v1389_v0 = vmul.f32 0.0625, %v262_v63  ;;  %v519_v63 = vmul.f32 %v1134_v50, %v518_v53  ;;  %v442_v23 = vmul.f32 0.0625, %v388_v39  ;;  %vm563_vm2 = vweird.f32 %v1444_v35 }
 0x137   :  { %1088 = vmatmul.msk.f32.gmra.mxu0 %vm678_vm3, %v1389_v0  ;;  %v520_v7 = vmul.f32 0.5, %v519_v63  ;;  %v474_v37 = vsub.f32 %v442_v23, %v458_v31  ;;  %v459_v29 = vmul.f32 %v1389_v0, %v1389_v0 }
 0x139   :  { %v490_v52 = vmax.f32 %v474_v37, 0.0 }
 0x13c   :  { %v265_v2 = vpop.f32.mrf.mxu1  ;;  %v391_v55 = vpop.f32.mrf.mxu2 }
 0x13d   :  { %v1393_v3 = vmul.f32 0.0625, %v265_v2  ;;  %v488_v2 = vmax.f32 %v472_v56, 0.0  ;;  %v443_v53 = vmul.f32 0.0625, %v391_v55 }
 0x13f   :  { %1089 = vmatmul.msk.f32.gmra.mxu0 %vm678_vm3, %v1393_v3  ;;  %v475_v56 = vsub.f32 %v443_v53, %v459_v29  ;;  %v460_v12 = vmul.f32 %v1393_v3, %v1393_v3 }
 0x141   :  { %v491_v55 = vmax.f32 %v475_v56, 0.0 }
 0x144   :  { %v268_v5 = vpop.f32.mrf.mxu1  ;;  %v394_v14 = vpop.f32.mrf.mxu2 }
 0x145   :  { %v1397_v6 = vmul.f32 0.0625, %v268_v5  ;;  %v528_v5 = vmul.f32 %v1136_v1, %v1417_v44 }
 0x147   :  { %1090 = vmatmul.msk.f32.gmra.mxu0 %vm678_vm3, %v1397_v6  ;;  %v529_v16 = vmul.f32 %v1136_v1, %v528_v5  ;;  %v461_v59 = vmul.f32 %v1397_v6, %v1397_v6 }
 0x14c   :  { %v271_v8 = vpop.f32.mrf.mxu1  ;;  %v397_v39 = vpop.f32.mrf.mxu2 }
 0x14d   :  { %v1401_v9 = vmul.f32 0.0625, %v271_v8 }
 0x14f   :  { %1091 = vmatmul.msk.f32.gmra.mxu0 %vm678_vm3, %v1401_v9 }
 0x154   :  { %v274_v10 = vpop.f32.mrf.mxu1 }
 0x155   :  { %v1405_v11 = vmul.f32 0.0625, %v274_v10  ;;  %v1434_v10 = vadd.f32 1e-05, %v488_v2  ;;  %v541_v2 = vsub.f32 1.5, %v540_v62 }
 0x157   :  { %1092 = vmatmul.msk.f32.vlgmr.msra.gmra.mxu1 %vm678_vm3, %v1405_v11  ;;  %1139 = vrsqrt.f32 %v1434_v10  ;;  %v542_v0 = vmul.f32 %v1138_v21, %v541_v2  ;;  %vm553_vm14 = vweird.f32 %v1434_v10 }
 0x158   :  { %1141 = vrsqrt.f32 %v1444_v35 }
 0x15c   :  { %v277_v15 = vpop.f32.mrf.mxu1 }
 0x15d   :  { %v1409_v17 = vmul.f32 0.0625, %v277_v15  ;;  %v521_v15 = vsub.f32 1.5, %v520_v7  ;;  %v1140_v51 = vpop.eup %1139  ;;  %v444_v7 = vmul.f32 0.0625, %v394_v14 }
 0x15e   :  { %v548_v54 = vmul.f32 %v1140_v51, %v1434_v10  ;;  %v1142_v5 = vpop.eup %1141  ;;  %vm554_vm13 = vweird.f32 %v1140_v51  ;;  %v462_v10 = vmul.f32 %v1401_v9, %v1401_v9 }
 0x15f   :  { %1093 = vmatmul.msk.f32.vlgmr.msra.gmra.mxu3 %vm678_vm3, %v1409_v17  ;;  %v522_v60 = vmul.f32 %v1134_v50, %v521_v15  ;;  %v558_v58 = vmul.f32 %v1142_v5, %v1444_v35  ;;  %v476_v15 = vsub.f32 %v444_v7, %v460_v12  ;;  %vm555_vm15 = vmor %vm553_vm14, %vm554_vm13  ;;  %vm564_vm0 = vweird.f32 %v1142_v5 }
 0x160   :  { %v549_v4 = vmul.f32 %v1140_v51, %v548_v54  ;;  %vm565_vm4 = vmor %vm563_vm2, %vm564_vm0 }
 0x161   :  { %v526_v42 = vsel %vm525_vm6, %v1134_v50, %v522_v60  ;;  %v1452_v50 = vadd.f32 1e-05, %v490_v52  ;;  %v559_v23 = vmul.f32 %v1142_v5, %v558_v58  ;;  %v492_v14 = vmax.f32 %v476_v15, 0.0 }
 0x162   :  { %v550_v44 = vmul.f32 0.5, %v549_v4  ;;  %v445_v60 = vmul.f32 0.0625, %v397_v39 }
 0x163   :  { %1143 = vrsqrt.f32 %v1452_v50  ;;  %v560_v3 = vmul.f32 0.5, %v559_v23  ;;  %vm573_vm6 = vweird.f32 %v1452_v50 }
 0x164   :  { %v280_v27 = vpop.f32.mrf.mxu1  ;;  %v551_v19 = vsub.f32 1.5, %v550_v44 }
 0x165   :  { %v1413_v33 = vmul.f32 0.0625, %v280_v27  ;;  %v530_v27 = vmul.f32 0.5, %v529_v16  ;;  %v546_v16 = vsel %vm545_vm12, %v1138_v21, %v542_v0  ;;  %v1468_v21 = vadd.f32 1e-05, %v492_v14 }
 0x166   :  { %v552_v31 = vmul.f32 %v1140_v51, %v551_v19  ;;  %v561_v46 = vsub.f32 1.5, %v560_v3  ;;  %v463_v0 = vmul.f32 %v1405_v11, %v1405_v11 }
 0x167   :  { %1094 = vmatmul.msk.f32.gmra.mxu3 %vm678_vm3, %v1413_v33  ;;  %vm593_vm12 = vweird.f32 %v1468_v21 }
 0x168   :  { %v562_v6 = vmul.f32 %v1142_v5, %v561_v46 }
 0x169   :  { %v1144_v25 = vpop.eup %1143 }
 0x16a   :  { %vm574_vm5 = vweird.f32 %v1144_v25 }
 0x16b   :  { %vm575_vm7 = vmor %vm573_vm6, %vm574_vm5 }
 0x16c   :  { %v283_v43 = vpop.f32.mrf.mxu1 }
 0x16d   :  { %v1419_v48 = vmul.f32 0.0625, %v283_v43  ;;  %v531_v43 = vsub.f32 1.5, %v530_v27  ;;  %v568_v27 = vmul.f32 %v1144_v25, %v1452_v50 }
 0x16f   :  { %1095 = vmatmul.msk.f32.gmra.mxu3 %vm678_vm3, %v1419_v48  ;;  %v569_v52 = vmul.f32 %v1144_v25, %v568_v27 }
 0x171   :  { %v570_v62 = vmul.f32 0.5, %v569_v52 }
 0x173   :  { %v571_v2 = vsub.f32 1.5, %v570_v62 }
 0x174   :  { %v286_v57 = vpop.f32.mrf.mxu1 }
 0x175   :  { %v1426_v61 = vmul.f32 0.0625, %v286_v57  ;;  %v532_v57 = vmul.f32 %v1136_v1, %v531_v43  ;;  %v556_v43 = vsel %vm555_vm15, %v1140_v51, %v552_v31  ;;  %v572_v9 = vmul.f32 %v1144_v25, %v571_v2 }
 0x176   :  { %v464_v31 = vmul.f32 %v1409_v17, %v1409_v17 }
 0x177   :  { %1096 = vmatmul.msk.f32.gmra.mxu3 %vm678_vm3, %v1426_v61  ;;  %v536_v63 = vsel %vm535_vm9, %v1136_v1, %v532_v57  ;;  %v1460_v1 = vadd.f32 1e-05, %v491_v55  ;;  %v576_v12 = vsel %vm575_vm7, %v1144_v25, %v572_v9 }
 0x179   :  { %1145 = vrsqrt.f32 %v1460_v1  ;;  %vm583_vm9 = vweird.f32 %v1460_v1 }
 0x17a   :  { %1147 = vrsqrt.f32 %v1468_v21 }
 0x17c   :  { %v289_v8 = vpop.f32.mrf.mxu1 }
 0x17d   :  { %v1436_v13 = vmul.f32 0.0625, %v289_v8  ;;  %v400_v8 = vpop.f32.mrf.mxu2 }
 0x17e   :  { %v446_v54 = vmul.f32 0.0625, %v400_v8 }
 0x17f   :  { %1097 = vmatmul.msk.f32.gmra.mxu3 %vm678_vm3, %v1436_v13  ;;  %v1146_v53 = vpop.eup %1145 }
 0x180   :  { %v578_v57 = vmul.f32 %v1146_v53, %v1460_v1  ;;  %v478_v29 = vsub.f32 %v446_v54, %v462_v10  ;;  %v1148_v55 = vpop.eup %1147  ;;  %vm584_vm8 = vweird.f32 %v1146_v53 }
 0x181   :  { %v588_v8 = vmul.f32 %v1148_v55, %v1468_v21  ;;  %vm585_vm10 = vmor %vm583_vm9, %vm584_vm8  ;;  %vm594_vm11 = vweird.f32 %v1148_v55  ;;  %v466_v21 = vmul.f32 %v1419_v48, %v1419_v48 }
 0x182   :  { %v579_v4 = vmul.f32 %v1146_v53, %v578_v57  ;;  %v494_v7 = vmax.f32 %v478_v29, 0.0  ;;  %v465_v57 = vmul.f32 %v1413_v33, %v1413_v33  ;;  %vm595_vm13 = vmor %vm593_vm12, %vm594_vm11 }
 0x184   :  { %v580_v35 = vmul.f32 0.5, %v579_v4 }
 0x185   :  { %v403_v37 = vpop.f32.mrf.mxu2 }
 0x186   :  { %v447_v58 = vmul.f32 0.0625, %v403_v37  ;;  %v581_v15 = vsub.f32 1.5, %v580_v35 }
 0x187   :  { %1099 = vmatmul.msk.f32.vlgmr.msrb.gmra.mxu3 %vm678_vm3, %v526_v42  ;;  %v477_v42 = vsub.f32 %v445_v60, %v461_v59 }
 0x188   :  { %v479_v44 = vsub.f32 %v447_v58, %v463_v0  ;;  %v582_v11 = vmul.f32 %v1146_v53, %v581_v15 }
 0x189   :  { %v493_v39 = vmax.f32 %v477_v42, 0.0 }
 0x18a   :  { %v495_v14 = vmax.f32 %v479_v44, 0.0  ;;  %v586_v59 = vsel %vm585_vm10, %v1146_v53, %v582_v11 }
 0x18b   :  { %v1476_v51 = vadd.f32 1e-05, %v493_v39 }
 0x18c   :  { %v1492_v25 = vadd.f32 1e-05, %v495_v14 }
 0x18d   :  { %v406_v56 = vpop.f32.mrf.mxu2  ;;  %1149 = vrsqrt.f32 %v1476_v51  ;;  %vm603_vm15 = vweird.f32 %v1476_v51 }
 0x18e   :  { %v448_v60 = vmul.f32 0.0625, %v406_v56  ;;  %vm623_vm7 = vweird.f32 %v1492_v25 }
 0x18f   :  { %1100 = vmatmul.msk.f32.gmra.mxu3 %vm678_vm3, %v536_v63  ;;  %v566_v63 = vsel %vm565_vm4, %v1142_v5, %v562_v6  ;;  %v1484_v5 = vadd.f32 1e-05, %v494_v7 }
 0x190   :  { %v480_v3 = vsub.f32 %v448_v60, %v464_v31 }
 0x191   :  { %1151 = vrsqrt.f32 %v1484_v5  ;;  %vm613_vm4 = vweird.f32 %v1484_v5 }
 0x192   :  { %1153 = vrsqrt.f32 %v1492_v25  ;;  %v496_v46 = vmax.f32 %v480_v3, 0.0 }
 0x193   :  { %v1150_v19 = vpop.eup %1149 }
 0x194   :  { %v598_v27 = vmul.f32 %v1150_v19, %v1476_v51  ;;  %v1500_v53 = vadd.f32 1e-05, %v496_v46  ;;  %vm604_vm14 = vweird.f32 %v1150_v19  ;;  %v467_v51 = vmul.f32 %v1426_v61, %v1426_v61 }
 0x195   :  { %v409_v23 = vpop.f32.mrf.mxu2  ;;  %vm605_vm0 = vmor %vm603_vm15, %vm604_vm14 }
 0x196   :  { %v599_v42 = vmul.f32 %v1150_v19, %v598_v27  ;;  %v449_v52 = vmul.f32 0.0625, %v409_v23  ;;  %1155 = vrsqrt.f32 %v1500_v53  ;;  %vm633_vm10 = vweird.f32 %v1500_v53 }
 0x197   :  { %1101 = vmatmul.msk.f32.gmra.mxu3 %vm678_vm3, %v546_v16  ;;  %v589_v16 = vmul.f32 %v1148_v55, %v588_v8 }
 0x198   :  { %v600_v1 = vmul.f32 0.5, %v599_v42  ;;  %v481_v6 = vsub.f32 %v449_v52, %v465_v57 }
 0x199   :  { %v590_v50 = vmul.f32 0.5, %v589_v16 }
 0x19a   :  { %v601_v10 = vsub.f32 1.5, %v600_v1 }
 0x19b   :  { %v591_v37 = vsub.f32 1.5, %v590_v50 }
 0x19c   :  { %v602_v7 = vmul.f32 %v1150_v19, %v601_v10 }
 0x19d   :  { %v412_v54 = vpop.f32.mrf.mxu2  ;;  %v592_v17 = vmul.f32 %v1148_v55, %v591_v37 }
 0x19e   :  { %v450_v2 = vmul.f32 0.0625, %v412_v54  ;;  %v606_v9 = vsel %vm605_vm0, %v1150_v19, %v602_v7 }
 0x19f   :  { %1102 = vmatmul.msk.f32.gmra.mxu3 %vm678_vm3, %v556_v43  ;;  %v1152_v43 = vpop.eup %1151  ;;  %v596_v62 = vsel %vm595_vm13, %v1148_v55, %v592_v17 }
 0x1a0   :  { %v608_v39 = vmul.f32 %v1152_v43, %v1484_v5  ;;  %v1154_v56 = vpop.eup %1153  ;;  %v482_v8 = vsub.f32 %v450_v2, %v466_v21  ;;  %vm614_vm2 = vweird.f32 %v1152_v43  ;;  %v468_v5 = vmul.f32 %v1436_v13, %v1436_v13 }
 0x1a1   :  { %v618_v4 = vmul.f32 %v1154_v56, %v1492_v25  ;;  %v1156_v44 = vpop.eup %1155  ;;  %vm615_vm5 = vmor %vm613_vm4, %vm614_vm2  ;;  %vm624_vm6 = vweird.f32 %v1154_v56 }
 0x1a2   :  { %v609_v29 = vmul.f32 %v1152_v43, %v608_v39  ;;  %v628_v16 = vmul.f32 %v1156_v44, %v1500_v53  ;;  %vm625_vm8 = vmor %vm623_vm7, %vm624_vm6  ;;  %vm634_vm9 = vweird.f32 %v1156_v44 }
 0x1a3   :  { %v619_v0 = vmul.f32 %v1154_v56, %v618_v4  ;;  %vm635_vm11 = vmor %vm633_vm10, %vm634_vm9 }
 0x1a4   :  { %v610_v33 = vmul.f32 0.5, %v609_v29  ;;  %v629_v50 = vmul.f32 %v1156_v44, %v628_v16 }
 0x1a5   :  { %v415_v58 = vpop.f32.mrf.mxu2  ;;  %v620_v23 = vmul.f32 0.5, %v619_v0 }
 0x1a6   :  { %v611_v35 = vsub.f32 1.5, %v610_v33  ;;  %v451_v15 = vmul.f32 0.0625, %v415_v58  ;;  %v630_v61 = vmul.f32 0.5, %v629_v50 }
 0x1a7   :  { %1103 = vmatmul.msk.f32.gmra.mxu3 %vm678_vm3, %v566_v63  ;;  %v497_v63 = vmax.f32 %v481_v6, 0.0  ;;  %v621_v11 = vsub.f32 1.5, %v620_v23  ;;  %v748_v23 = vpop.f32.mrf.mxu0 }
 0x1a8   :  { %v612_v48 = vmul.f32 %v1152_v43, %v611_v35  ;;  %v483_v14 = vsub.f32 %v451_v15, %v467_v51  ;;  %v631_v39 = vsub.f32 1.5, %v630_v61  ;;  %v1548_v61 = vld [vmem:[%s1671_s3] ss:$0 sm:$0xff] }
 0x1a9   :  { %v1508_v55 = vadd.f32 1e-05, %v497_v63  ;;  %v622_v42 = vmul.f32 %v1154_v56, %v621_v11 }
 0x1aa   :  { %v616_v27 = vsel %vm615_vm5, %v1152_v43, %v612_v48  ;;  %v499_v3 = vmax.f32 %v483_v14, 0.0  ;;  %v632_v6 = vmul.f32 %v1156_v44, %v631_v39 }
 0x1ab   :  { %1157 = vrsqrt.f32 %v1508_v55  ;;  %v626_v52 = vsel %vm625_vm8, %v1154_v56, %v622_v42  ;;  %vm643_vm13 = vweird.f32 %v1508_v55 }
 0x1ac   :  { %v515_v46 = vadd.f32 1e-05, %v499_v3  ;;  %v636_v25 = vsel %vm635_vm11, %v1156_v44, %v632_v6  ;;  %v909_v3 = vsub.f32 %v1262_v18, %v748_v23 }
 0x1ad   :  { %v418_v60 = vpop.f32.mrf.mxu2 }
 0x1ae   :  { %vm663_vm5 = vweird.f32 %v515_v46 }
 0x1af   :  { %1104 = vmatmul.msk.f32.gmra.mxu3 %vm678_vm3, %v576_v12  ;;  %v498_v12 = vmax.f32 %v482_v8, 0.0 }
 0x1b1   :  { %v514_v19 = vadd.f32 1e-05, %v498_v12  ;;  %v1158_v31 = vpop.eup %1157 }
 0x1b2   :  { %v638_v37 = vmul.f32 %v1158_v31, %v1508_v55  ;;  %vm644_vm12 = vweird.f32 %v1158_v31 }
 0x1b3   :  { %1159 = vrsqrt.f32 %v514_v19  ;;  %vm645_vm14 = vmor %vm643_vm13, %vm644_vm12  ;;  %vm653_vm0 = vweird.f32 %v514_v19 }
 0x1b4   :  { %v639_v54 = vmul.f32 %v1158_v31, %v638_v37  ;;  %1161 = vrsqrt.f32 %v515_v46 }
 0x1b7   :  { %1105 = vmatmul.msk.f32.gmra.mxu3 %vm678_vm3, %v586_v59  ;;  %v452_v59 = vmul.f32 0.0625, %v418_v60 }
 0x1b9   :  { %v484_v43 = vsub.f32 %v452_v59, %v468_v5  ;;  %v1160_v17 = vpop.eup %1159  ;;  %v1543_v59 = vld [vmem:[%s1670_s2] ss:$0 sm:$0xff] }
 0x1ba   :  { %v648_v57 = vmul.f32 %v1160_v17, %v514_v19  ;;  %v1162_v63 = vpop.eup %1161  ;;  %vm654_vm15 = vweird.f32 %v1160_v17 }
 0x1bb   :  { %v500_v1 = vmax.f32 %v484_v43, 0.0  ;;  %v658_v56 = vmul.f32 %v1162_v63, %v515_v46  ;;  %vm655_vm2 = vmor %vm653_vm0, %vm654_vm15  ;;  %vm664_vm4 = vweird.f32 %v1162_v63 }
 0x1bc   :  { %v649_v29 = vmul.f32 %v1160_v17, %v648_v57  ;;  %vm665_vm6 = vmor %vm663_vm5, %vm664_vm4 }
 0x1bd   :  { %v516_v13 = vadd.f32 1e-05, %v500_v1  ;;  %v659_v21 = vmul.f32 %v1162_v63, %v658_v56 }
 0x1be   :  { %v650_v7 = vmul.f32 0.5, %v649_v29 }
 0x1bf   :  { %1106 = vmatmul.msk.f32.gmra.mxu3 %vm678_vm3, %v596_v62  ;;  %v640_v62 = vmul.f32 0.5, %v639_v54  ;;  %1163 = vrsqrt.f32 %v516_v13  ;;  %v660_v0 = vmul.f32 0.5, %v659_v21  ;;  %vm673_vm8 = vweird.f32 %v516_v13 }
 0x1c0   :  { %v651_v53 = vsub.f32 1.5, %v650_v7 }
 0x1c1   :  { %v641_v10 = vsub.f32 1.5, %v640_v62  ;;  %v661_v12 = vsub.f32 1.5, %v660_v0 }
 0x1c2   :  { %v652_v35 = vmul.f32 %v1160_v17, %v651_v53 }
 0x1c3   :  { %v642_v4 = vmul.f32 %v1158_v31, %v641_v10  ;;  %v662_v16 = vmul.f32 %v1162_v63, %v661_v12 }
 0x1c4   :  { %v656_v44 = vsel %vm655_vm2, %v1160_v17, %v652_v35 }
 0x1c5   :  { %v646_v33 = vsel %vm645_vm14, %v1158_v31, %v642_v4  ;;  %v1164_v58 = vpop.eup %1163  ;;  %v666_v51 = vsel %vm665_vm6, %v1162_v63, %v662_v16 }
 0x1c6   :  { %v668_v8 = vmul.f32 %v1164_v58, %v516_v13  ;;  %vm674_vm7 = vweird.f32 %v1164_v58 }
 0x1c7   :  { %1107 = vmatmul.msk.f32.gmra.mxu3 %vm678_vm3, %v606_v9  ;;  %vm675_vm9 = vmor %vm673_vm8, %vm674_vm7 }
 0x1c8   :  { %v669_v15 = vmul.f32 %v1164_v58, %v668_v8 }
 0x1ca   :  { %v670_v48 = vmul.f32 0.5, %v669_v15 }
 0x1cc   :  { %v671_v14 = vsub.f32 1.5, %v670_v48 }
 0x1ce   :  { %v672_v19 = vmul.f32 %v1164_v58, %v671_v14 }
 0x1cf   :  { %1108 = vmatmul.msk.f32.gmra.mxu3 %vm678_vm3, %v616_v27  ;;  %v751_v27 = vpop.f32.mrf.mxu0 }
 0x1d0   :  { %v676_v11 = vsel %vm675_vm9, %v1164_v58, %v672_v19  ;;  %v910_v43 = vsub.f32 %v1269_v20, %v751_v27 }
 0x1d7   :  { %1109 = vmatmul.msk.f32.gmra.mxu3 %vm678_vm3, %v626_v52  ;;  %v754_v31 = vpop.f32.mrf.mxu0 }
 0x1d8   :  { %v911_v1 = vsub.f32 %v1276_v22, %v754_v31 }
 0x1df   :  { %1110 = vmatmul.msk.f32.gmra.mxu3 %vm678_vm3, %v636_v25  ;;  %v757_v18 = vpop.f32.mrf.mxu0 }
 0x1e0   :  { %v912_v25 = vsub.f32 %v1283_v24, %v757_v18  ;;  %v778_v18 = vpop.f32.mrf.mxu1 }
 0x1e2   :  { %v1524_v2 = vpop.f32.mrf.mxu3 }
 0x1e7   :  { %1111 = vmatmul.msk.f32.gmra.mxu3 %vm678_vm3, %v646_v33  ;;  %v760_v6 = vpop.f32.mrf.mxu0 }
 0x1e8   :  { %v913_v4 = vsub.f32 %v1290_v26, %v760_v6 }
 0x1ea   :  { %v1528_v9 = vpop.f32.mrf.mxu3 }
 0x1ef   :  { %1112 = vmatmul.msk.f32.gmra.mxu3 %vm678_vm3, %v656_v44  ;;  %v763_v63 = vpop.f32.mrf.mxu0 }
 0x1f0   :  { %v914_v58 = vsub.f32 %v1297_v28, %v763_v63 }
 0x1f2   :  { %v1531_v55 = vpop.f32.mrf.mxu3 }
 0x1f7   :  { %1113 = vmatmul.msk.f32.gmra.mxu3 %vm678_vm3, %v666_v51  ;;  %v766_v21 = vpop.f32.mrf.mxu0 }
 0x1f8   :  { %v915_v44 = vsub.f32 %v1304_v30, %v766_v21 }
 0x1fa   :  { %v1534_v60 = vpop.f32.mrf.mxu3 }
 0x1ff   :  { %1114 = vmatmul.msk.f32.gmra.mxu3 %vm678_vm3, %v676_v11  ;;  %v769_v12 = vpop.f32.mrf.mxu0 }
 0x200   :  { %v916_v23 = vsub.f32 %v1311_v32, %v769_v12 }
 0x202   :  { %v1537_v50 = vpop.f32.mrf.mxu3 }
 0x207   :  { %v772_v14 = vpop.f32.mrf.mxu0 }
 0x208   :  { %v917_v11 = vsub.f32 %v1318_v34, %v772_v14 }
 0x20a   :  { %v861_v37 = vpop.f32.mrf.mxu3 }
 0x20b   :  { %v925_v42 = vmul.f32 %v909_v3, %v861_v37 }
 0x20d   :  { %v945_v5 = vmul.f32 %v1543_v59, %v925_v42 }
 0x20f   :  { %v965_v46 = vadd.f32 %v1548_v61, %v945_v5  ;;  %v775_v37 = vpop.f32.mrf.mxu0 }
 0x210   :  { %v918_v5 = vsub.f32 %v1325_v36, %v775_v37 }
 0x211   :  { %981 = vst.msk [vmem:[%s1672_s6] sm:$0xff] %vm178_vm1, %v965_v46 }
 0x212   :  { %v864_v52 = vpop.f32.mrf.mxu3 }
 0x213   :  { %v926_v39 = vmul.f32 %v910_v43, %v864_v52 }
 0x215   :  { %v946_v54 = vmul.f32 %v1543_v59, %v926_v39  ;;  %v919_v39 = vsub.f32 %v1332_v38, %v778_v18 }
 0x217   :  { %v966_v17 = vadd.f32 %v1548_v61, %v946_v54 }
 0x219   :  { %982 = vst.msk [vmem:[%s1672_s6 + $0x8] sm:$0xff] %vm178_vm1, %v966_v17 }
 0x21a   :  { %v867_v20 = vpop.f32.mrf.mxu3 }
 0x21b   :  { %v927_v57 = vmul.f32 %v911_v1, %v867_v20  ;;  %v920_v20 = vsub.f32 %v1339_v40, %v1524_v2 }
 0x21d   :  { %v947_v62 = vmul.f32 %v1543_v59, %v927_v57 }
 0x21f   :  { %v967_v13 = vadd.f32 %v1548_v61, %v947_v62 }
 0x221   :  { %983 = vst.msk [vmem:[%s1672_s6 + $0x10] sm:$0xff] %vm178_vm1, %v967_v13  ;;  %v921_v13 = vsub.f32 %v1341_v41, %v1528_v9 }
 0x222   :  { %v870_v22 = vpop.f32.mrf.mxu3 }
 0x223   :  { %v928_v10 = vmul.f32 %v912_v25, %v870_v22 }
 0x225   :  { %v948_v29 = vmul.f32 %v1543_v59, %v928_v10  ;;  %v922_v10 = vsub.f32 %v1355_v45, %v1531_v55 }
 0x227   :  { %v968_v56 = vadd.f32 %v1548_v61, %v948_v29 }
 0x229   :  { %984 = vst.msk [vmem:[%s1672_s6 + $0x18] sm:$0xff] %vm178_vm1, %v968_v56  ;;  %v923_v56 = vsub.f32 %v1363_v47, %v1534_v60 }
 0x22a   :  { %v873_v24 = vpop.f32.mrf.mxu3 }
 0x22b   :  { %v929_v7 = vmul.f32 %v913_v4, %v873_v24 }
 0x22d   :  { %v949_v33 = vmul.f32 %v1543_v59, %v929_v7  ;;  %v924_v7 = vsub.f32 %v1370_v49, %v1537_v50 }
 0x22f   :  { %v969_v53 = vadd.f32 %v1548_v61, %v949_v33 }
 0x231   :  { %985 = vst.msk [vmem:[%s1672_s6 + $0x20] sm:$0xff] %vm178_vm1, %v969_v53 }
 0x232   :  { %v876_v26 = vpop.f32.mrf.mxu3 }
 0x233   :  { %v930_v8 = vmul.f32 %v914_v58, %v876_v26 }
 0x235   :  { %v950_v35 = vmul.f32 %v1543_v59, %v930_v8 }
 0x237   :  { %v970_v0 = vadd.f32 %v1548_v61, %v950_v35 }
 0x239   :  { %986 = vst.msk [vmem:[%s1672_s6 + $0x28] sm:$0xff] %vm178_vm1, %v970_v0 }
 0x23a   :  { %v879_v28 = vpop.f32.mrf.mxu3 }
 0x23b   :  { %v931_v15 = vmul.f32 %v915_v44, %v879_v28 }
 0x23d   :  { %v951_v16 = vmul.f32 %v1543_v59, %v931_v15 }
 0x23f   :  { %v971_v48 = vadd.f32 %v1548_v61, %v951_v16 }
 0x241   :  { %987 = vst.msk [vmem:[%s1672_s6 + $0x30] sm:$0xff] %vm178_vm1, %v971_v48 }
 0x242   :  { %v882_v30 = vpop.f32.mrf.mxu3 }
 0x243   :  { %v932_v51 = vmul.f32 %v916_v23, %v882_v30 }
 0x245   :  { %v952_v19 = vmul.f32 %v1543_v59, %v932_v51 }
 0x247   :  { %v972_v27 = vadd.f32 %v1548_v61, %v952_v19 }
 0x249   :  { %988 = vst.msk [vmem:[%s1672_s6 + $0x38] sm:$0xff] %vm178_vm1, %v972_v27 }
 0x24a   :  { %v885_v32 = vpop.f32.mrf.mxu3 }
 0x24b   :  { %v933_v31 = vmul.f32 %v917_v11, %v885_v32 }
 0x24d   :  { %v953_v3 = vmul.f32 %v1543_v59, %v933_v31 }
 0x24f   :  { %v973_v42 = vadd.f32 %v1548_v61, %v953_v3 }
 0x251   :  { %989 = vst.msk [vmem:[%s1672_s6 + $0x40] sm:$0xff] %vm178_vm1, %v973_v42 }
 0x252   :  { %v888_v34 = vpop.f32.mrf.mxu3 }
 0x253   :  { %v934_v46 = vmul.f32 %v918_v5, %v888_v34 }
 0x255   :  { %v954_v43 = vmul.f32 %v1543_v59, %v934_v46 }
 0x257   :  { %v974_v52 = vadd.f32 %v1548_v61, %v954_v43 }
 0x259   :  { %990 = vst.msk [vmem:[%s1672_s6 + $0x48] sm:$0xff] %vm178_vm1, %v974_v52 }
 0x25a   :  { %v891_v36 = vpop.f32.mrf.mxu3 }
 0x25b   :  { %v935_v54 = vmul.f32 %v919_v39, %v891_v36 }
 0x25d   :  { %v955_v17 = vmul.f32 %v1543_v59, %v935_v54 }
 0x25f   :  { %v975_v1 = vadd.f32 %v1548_v61, %v955_v17 }
 0x261   :  { %991 = vst.msk [vmem:[%s1672_s6 + $0x50] sm:$0xff] %vm178_vm1, %v975_v1 }
 0x262   :  { %v894_v38 = vpop.f32.mrf.mxu3 }
 0x263   :  { %v936_v57 = vmul.f32 %v920_v20, %v894_v38 }
 0x265   :  { %v956_v6 = vmul.f32 %v1543_v59, %v936_v57 }
 0x267   :  { %v976_v62 = vadd.f32 %v1548_v61, %v956_v6 }
 0x269   :  { %992 = vst.msk [vmem:[%s1672_s6 + $0x58] sm:$0xff] %vm178_vm1, %v976_v62 }
 0x26a   :  { %v897_v40 = vpop.f32.mrf.mxu3 }
 0x26b   :  { %v937_v2 = vmul.f32 %v921_v13, %v897_v40 }
 0x26d   :  { %v957_v25 = vmul.f32 %v1543_v59, %v937_v2 }
 0x26f   :  { %v977_v22 = vadd.f32 %v1548_v61, %v957_v25 }
 0x271   :  { %993 = vst.msk [vmem:[%s1672_s6 + $0x60] sm:$0xff] %vm178_vm1, %v977_v22 }
 0x272   :  { %v900_v41 = vpop.f32.mrf.mxu3 }
 0x273   :  { %v938_v9 = vmul.f32 %v922_v10, %v900_v41 }
 0x275   :  { %v958_v29 = vmul.f32 %v1543_v59, %v938_v9 }
 0x277   :  { %v978_v63 = vadd.f32 %v1548_v61, %v958_v29 }
 0x279   :  { %994 = vst.msk [vmem:[%s1672_s6 + $0x68] sm:$0xff] %vm178_vm1, %v978_v63 }
 0x27a   :  { %v903_v45 = vpop.f32.mrf.mxu3 }
 0x27b   :  { %v939_v55 = vmul.f32 %v923_v56, %v903_v45 }
 0x27d   :  { %v959_v4 = vmul.f32 %v1543_v59, %v939_v55 }
 0x27f   :  { %v979_v24 = vadd.f32 %v1548_v61, %v959_v4 }
 0x281   :  { %995 = vst.msk [vmem:[%s1672_s6 + $0x70] sm:$0xff] %vm178_vm1, %v979_v24 }
 0x282   :  { %v906_v47 = vpop.f32.mrf.mxu3 }
 0x283   :  { %v940_v60 = vmul.f32 %v924_v7, %v906_v47 }
 0x285   :  { %v960_v33 = vmul.f32 %v1543_v59, %v940_v60 }
 0x287   :  { %v980_v53 = vadd.f32 %v1548_v61, %v960_v33 }
 0x289   :  { %996 = vst.msk [vmem:[%s1672_s6 + $0x78] sm:$0xff] %vm178_vm1, %v980_v53 }

</bundles_post_ra>
